<compile_context>
chip_gen: v7x
topology: tpu7x:2x2x1
jax: 0.10.0
libtpu: 0.0.40
codegen_flags: <defaults>
</compile_context>

<pallas_src>
import functools

import jax
import jax.numpy as jnp
from jax.experimental import pallas as pl
from jax.experimental.pallas import tpu as pltpu


def _round_up(a, b):
    return (a + b - 1) // b * b


def _pick_k_tile(d_model):
    for tk in (512, 256, 128):
        if d_model % tk == 0 and d_model >= tk:
            return tk
    return d_model  # small / odd d_model: single full-K block


def _compress_kernel(x_ref, w_ref, b_ref, o_ref, acc_ref):
    # x_ref: [TM, TK]  w_ref: [TK, d_c]  b_ref: [1, d_c] (f32)
    # o_ref: [TM, d_c] acc_ref: [TM, d_c] f32 scratch
    k = pl.program_id(1)

    @pl.when(k == 0)
    def _():
        acc_ref[...] = jnp.zeros_like(acc_ref)

    acc_ref[...] += jnp.dot(
        x_ref[...], w_ref[...], preferred_element_type=jnp.float32
    )

    @pl.when(k == pl.num_programs(1) - 1)
    def _():
        o_ref[...] = (acc_ref[...] + b_ref[...]).astype(o_ref.dtype)


@functools.partial(jax.jit, static_argnames=("d_rotate", "compute_dtype"))
def projection_system_forward(x, w_compress_t, b_compress, *, d_rotate,
                              compute_dtype=None):
    """x: [batch, seq, d_model]; w_compress_t: [d_model, d_c] (pre-transposed);
    b_compress: [d_c].  compute_dtype (e.g. jnp.bfloat16) casts the matmul
    inputs for MXU-native throughput; accumulation stays f32."""
    batch, seq, d_model = x.shape
    d_c = w_compress_t.shape[1]
    d_rot = min(d_rotate, d_c // 2)
    out_dtype = x.dtype

    if compute_dtype is not None:
        x = x.astype(compute_dtype)
        w_compress_t = w_compress_t.astype(compute_dtype)

    M = batch * seq
    x2d = x.reshape(M, d_model)
    b2d = b_compress.reshape(1, d_c).astype(jnp.float32)

    # Per-generation-safe tile sizes (fits well under v7x's 64 MiB VMEM too).
    TM = min(512, _round_up(M, 8))
    TK = _pick_k_tile(d_model)
    M_pad = _round_up(M, TM)
    if M_pad != M:
        x2d = jnp.pad(x2d, ((0, M_pad - M), (0, 0)))

    grid = (M_pad // TM, d_model // TK)

    out_itemsize = jnp.dtype(out_dtype).itemsize
    cost = pl.CostEstimate(
        flops=2 * M_pad * d_model * d_c,
        transcendentals=0,
        bytes_accessed=(x2d.size * x2d.dtype.itemsize
                        + w_compress_t.size * w_compress_t.dtype.itemsize
                        + b2d.size * 4
                        + M_pad * d_c * out_itemsize),
    )

    compressed_2d = pl.pallas_call(
        _compress_kernel,
        out_shape=jax.ShapeDtypeStruct((M_pad, d_c), out_dtype),
        grid_spec=pltpu.PrefetchScalarGridSpec(
            num_scalar_prefetch=0,
            grid=grid,
            in_specs=[
                pl.BlockSpec((TM, TK), lambda i, k: (i, k)),     # activations
                pl.BlockSpec((TK, d_c), lambda i, k: (k, 0)),    # weight (resident over M)
                pl.BlockSpec((1, d_c), lambda i, k: (0, 0)),     # bias
            ],
            out_specs=pl.BlockSpec((TM, d_c), lambda i, k: (i, 0)),
            scratch_shapes=[pltpu.VMEM((TM, d_c), jnp.float32)],
        ),
        compiler_params=pltpu.CompilerParams(
            dimension_semantics=("parallel", "arbitrary"),
        ),
        cost_estimate=cost,
    )(x2d, w_compress_t, b2d)

    compressed = compressed_2d[:M].reshape(batch, seq, d_c)
    return {
        "compressed": compressed,
        "rotate_dim": d_rot,
        "residual_dim": d_c - d_rot,
    }


def init_params(key, d_model, d_c):
    """Mirror the module's compress-layer init, returning the weight already
    transposed to [d_model, d_c] so the forward never pays a per-call transpose.

    compress.weight: orthogonal init (gain=0.02) on the [d_c, d_model] layout.
    compress.bias:   PyTorch Linear default uniform(-1/sqrt(fan_in), 1/sqrt(fan_in)).
    """
    # TODO(synk): the module also defines `decompress` (Linear d_c -> 3*d_model)
    # in __init__ but never uses it in forward, so it is not materialized here.
    k_w, k_b = jax.random.split(key)
    ortho = jax.nn.initializers.orthogonal(scale=0.02)
    w_compress = ortho(k_w, (d_c, d_model), jnp.float32)   # PyTorch layout
    w_compress_t = jnp.asarray(w_compress.T)               # one-time transpose
    bound = 1.0 / jnp.sqrt(jnp.float32(d_model))
    b_compress = jax.random.uniform(k_b, (d_c,), jnp.float32, -bound, bound)
    return w_compress_t, b_compress


if __name__ == "__main__":
    # --- small demo shape consistent with the module's forward -------------
    batch, seq, d_model = 2, 8, 32
    d_c, d_rotate = 16, 8

    key = jax.random.PRNGKey(0)
    k_x, k_p, k_x2, k_p2 = jax.random.split(key, 4)
    x = jax.random.normal(k_x, (batch, seq, d_model), jnp.float32)
    w_t, b = init_params(k_p, d_model, d_c)

    out = projection_system_forward(x, w_t, b, d_rotate=d_rotate)
    compressed = jax.block_until_ready(out["compressed"])

    ref = x @ w_t + b
    assert compressed.shape == (batch, seq, d_c)
    assert int(out["rotate_dim"]) == min(d_rotate, d_c // 2)
    assert int(out["residual_dim"]) == d_c - min(d_rotate, d_c // 2)
    assert jnp.allclose(compressed, ref, atol=1e-5, rtol=1e-5)

    # bf16-compute path (MXU-native inputs, f32 accumulation).
    out_bf16 = projection_system_forward(
        x, w_t, b, d_rotate=d_rotate, compute_dtype=jnp.bfloat16)
    compressed_bf16 = jax.block_until_ready(out_bf16["compressed"])
    assert jnp.allclose(compressed_bf16, ref, atol=2e-2, rtol=2e-2)

    # Uneven M + multi-step K reduction + lane-dense d_c (exercises padding,
    # the accumulator init/epilogue, and the K grid axis).
    b2_, s2_, dm2, dc2 = 3, 5, 384, 128
    x2 = jax.random.normal(k_x2, (b2_, s2_, dm2), jnp.float32)
    w_t2, b2 = init_params(k_p2, dm2, dc2)
    out2 = projection_system_forward(x2, w_t2, b2, d_rotate=32)
    c2 = jax.block_until_ready(out2["compressed"])
    ref2 = x2 @ w_t2 + b2
    assert c2.shape == (b2_, s2_, dc2)
    assert jnp.allclose(c2, ref2, atol=1e-4, rtol=1e-4)

    print("KERNEL_OK")
</pallas_src>

<mosaic_0001>
module attributes {stable_mosaic.version = 11 : i64} {
  func.func @_compress_kernel(%arg0: i32, %arg1: i32, %arg2: memref<16x32xf32, #tpu.memory_space<vmem>>, %arg3: memref<32x16xf32, #tpu.memory_space<vmem>>, %arg4: memref<1x16xf32, #tpu.memory_space<vmem>>, %arg5: memref<16x16xf32, #tpu.memory_space<vmem>>, %arg6: memref<16x16xf32, #tpu.memory_space<vmem>>) attributes {dimension_semantics = [#tpu.dimension_semantics<parallel>, #tpu.dimension_semantics<arbitrary>], iteration_bounds = array<i64: 1, 1>, scalar_prefetch = 0 : i64, scratch_operands = 1 : i64, tpu.core_type = #tpu.core_type<tc>, window_params = [{transform_indices = @transform_0, window_bounds = array<i64: 16, 32>}, {transform_indices = @transform_1, window_bounds = array<i64: 32, 16>}, {pipeline_mode = #tpu.pipeline_mode<synchronous>, transform_indices = @transform_2, window_bounds = array<i64: 1, 16>}, {transform_indices = @transform_3, window_bounds = array<i64: 16, 16>}]} {
    %c0_i32 = arith.constant 0 : i32
    %0 = arith.cmpi eq, %arg1, %c0_i32 : i32
    %1 = arith.extui %0 : i1 to i32
    %c0_i32_0 = arith.constant 0 : i32
    %2 = arith.cmpi ne, %1, %c0_i32_0 : i32
    scf.if %2 {
      %cst_10 = arith.constant 0.000000e+00 : f32
      %12 = vector.broadcast %cst_10 : f32 to vector<16x16xf32>
      %c0_11 = arith.constant 0 : index
      %c0_12 = arith.constant 0 : index
      %13 = vector.load %arg6[%c0_11, %c0_12] : memref<16x16xf32, #tpu.memory_space<vmem>>, vector<16x16xf32>
      tpu.vector_store %arg6[%c0_11, %c0_12], %12 {strides = array<i32>} : memref<16x16xf32, #tpu.memory_space<vmem>>, vector<16x16xf32>,
    } else {
    }
    %c0 = arith.constant 0 : index
    %c0_1 = arith.constant 0 : index
    %3 = vector.load %arg6[%c0, %c0_1] : memref<16x16xf32, #tpu.memory_space<vmem>>, vector<16x16xf32>
    %c0_2 = arith.constant 0 : index
    %c0_3 = arith.constant 0 : index
    %4 = vector.load %arg2[%c0_2, %c0_3] : memref<16x32xf32, #tpu.memory_space<vmem>>, vector<16x32xf32>
    %c0_4 = arith.constant 0 : index
    %c0_5 = arith.constant 0 : index
    %5 = vector.load %arg3[%c0_4, %c0_5] : memref<32x16xf32, #tpu.memory_space<vmem>>, vector<32x16xf32>
    %cst = arith.constant dense<0.000000e+00> : vector<16x16xf32>
    %6 = tpu.matmul %4, %5, %cst {dimension_numbers = #tpu.dot_dimension_numbers<[1], [0], [0], [1], [0, 0, 1, 1], [], []>} : vector<16x32xf32>, vector<32x16xf32>, vector<16x16xf32> -> vector<16x16xf32>
    %7 = arith.addf %3, %6 : vector<16x16xf32>
    %c0_6 = arith.constant 0 : index
    %c0_7 = arith.constant 0 : index
    %8 = vector.load %arg6[%c0_6, %c0_7] : memref<16x16xf32, #tpu.memory_space<vmem>>, vector<16x16xf32>
    tpu.vector_store %arg6[%c0_6, %c0_7], %7 {strides = array<i32>} : memref<16x16xf32, #tpu.memory_space<vmem>>, vector<16x16xf32>,
    %c0_i32_8 = arith.constant 0 : i32
    %9 = arith.cmpi eq, %arg1, %c0_i32_8 : i32
    %10 = arith.extui %9 : i1 to i32
    %c0_i32_9 = arith.constant 0 : i32
    %11 = arith.cmpi ne, %10, %c0_i32_9 : i32
    scf.if %11 {
      %c0_10 = arith.constant 0 : index
      %c0_11 = arith.constant 0 : index
      %12 = vector.load %arg6[%c0_10, %c0_11] : memref<16x16xf32, #tpu.memory_space<vmem>>, vector<16x16xf32>
      %c0_12 = arith.constant 0 : index
      %c0_13 = arith.constant 0 : index
      %13 = vector.load %arg4[%c0_12, %c0_13] : memref<1x16xf32, #tpu.memory_space<vmem>>, vector<1x16xf32>
      %14 = vector.broadcast %13 : vector<1x16xf32> to vector<16x16xf32>
      %15 = arith.addf %12, %14 : vector<16x16xf32>
      %c0_14 = arith.constant 0 : index
      %c0_15 = arith.constant 0 : index
      %16 = vector.load %arg5[%c0_14, %c0_15] : memref<16x16xf32, #tpu.memory_space<vmem>>, vector<16x16xf32>
      tpu.vector_store %arg5[%c0_14, %c0_15], %15 {strides = array<i32>} : memref<16x16xf32, #tpu.memory_space<vmem>>, vector<16x16xf32>,
    } else {
    }
    return
  }
  func.func @transform_0(%arg0: i32, %arg1: i32) -> (i32, i32) {
    %c0_i32 = arith.constant 0 : i32
    return %arg0, %arg1 : i32, i32
  }
  func.func @transform_1(%arg0: i32, %arg1: i32) -> (i32, i32) {
    %c0_i32 = arith.constant 0 : i32
    %c0_i32_0 = arith.constant 0 : i32
    return %arg1, %c0_i32 : i32, i32
  }
  func.func @transform_2(%arg0: i32, %arg1: i32) -> (i32, i32) {
    %c0_i32 = arith.constant 0 : i32
    %c0_i32_0 = arith.constant 0 : i32
    %c0_i32_1 = arith.constant 0 : i32
    return %c0_i32, %c0_i32_0 : i32, i32
  }
  func.func @transform_3(%arg0: i32, %arg1: i32) -> (i32, i32) {
    %c0_i32 = arith.constant 0 : i32
    %c0_i32_0 = arith.constant 0 : i32
    return %arg0, %c0_i32 : i32, i32
  }
}

</mosaic_0001>

<bundles_post_ra>
// kernel: projection_system_forward.1
= control target key start
LH: loop header
LB: loop body
LE: loop exit
PB: predicated region body
PF: predicated region fallthrough
CT: control target
= control target key end

     0   :  { %vm30_vm0 = vcmask 261120   ;;  %vm19_vm1 = vcmask 130048   ;;  %v205_v6 = vmov 0.0   ;;  %s270_s0 = inlined_call_operand.vmem [shape: f32[16,32], index: 0, kind: input, shape index: {}]   ;;  %s271_s1 = inlined_call_operand.vmem [shape: f32[32,16], index: 1, kind: input, shape index: {}]   ;;  %s272_s2 = inlined_call_operand.vmem [shape: f32[1,16], index: 2, kind: input, shape index: {}]   ;;  %s273_s3 = inlined_call_operand.hbm [shape: f32[16,16], index: 3, kind: output, shape index: {}]  }
   0x1   :  { %v26_v0 = vld [vmem:[%s271_s1] sm:$0xff]  ;;  %v27_v1 = vld [vmem:[%s271_s1 + $0x8] sm:$0xff]  ;;  %v28_v2 = vld [vmem:[%s271_s1 + $0x10] sm:$0xff]  ;;  %21 = vst.msk [vmem:[#allocation2 + $0x8] sm:$0xff] %vm19_vm1, %v205_v6 }
   0x2   :  { %v169_v3 = vpack.c.bf16 %v27_v1, %v26_v0  ;;  %v29_v4 = vld [vmem:[%s271_s1 + $0x18] sm:$0xff]  ;;  %v24_v5 = vld [vmem:[%s270_s0] sm:$0xff]  ;;  %20 = vst.msk [vmem:[#allocation2] sm:$0xff] %vm19_vm1, %v205_v6 }
   0x3   :  { %v173_v7 = vpack.c.bf16 %v29_v4, %v28_v2  ;;  %166 = vmatprep.mubr.msk.f32.mxu0 %vm30_vm0, %v24_v5 }
   0x4   :  { %8 = vsyncpa [#allocation4], 0  ;;  %170 = vmatprep.subr.bf16.mxu0 %v169_v3  ;;  %v25_v8 = vld [vmem:[%s270_s0 + $0x8] sm:$0xff]  ;;  %v151_v15 = vld [vmem:[%s272_s2] ss:$0 sm:$0xff]  ;;  %s206_s25 = smov [#allocation3]  }
   0x5   :  { %172 = vmatpush3.bf16.msra.mxu0 %v169_v3  ;;  %s138_s26 = sshll.u32 %s206_s25, 4  ;;  %s139_s26 = int_to_ptr.vmem [resolvable:$true] %s138_s26 }
   0x6   :  { %174 = vmatprep.subr.bf16.mxu0 %v173_v7  ;;  %s181_s0 = scalar_lea.vmem %s139_s26, 256  ;;  %p186_p1 = scmp.lt.s32.totalorder %s139_s26, %s139_s26 }
   0x7   :  { %p182_p0 = scmp.ne.s32.totalorder %s139_s26, %s181_s0  ;;  %p187_p2 = scmp.lt.s32.totalorder %s181_s0, %s181_s0 }
   0x8   :  { %v23_v9 = vld [vmem:[#allocation2 + $0x8] sm:$0xff] }
   0x9   :  { %176 = vmatpush3.bf16.msra.mxu0 %v173_v7  ;;  %v22_v10 = vld [vmem:[#allocation2] sm:$0xff]  ;;  %p188_p3 = por %p187_p2, %p186_p1 }
   0xb   :  { %p189_p4 = pnand %p188_p3, %p182_p0 }
   0xc   :  { %167 = vmatmul.mubr.msk.f32.vlgmr.msra.gmra.mrb[0].mxu0 %vm30_vm0, %v25_v8 }
  0xdf   :  { %v168_v11 = vpop.f32.mrb[0].mxu0 }
  0xe0   :  { %v113_v12 = vadd.f32 %v168_v11, %v23_v9  ;;  %v103_v13 = vpop.f32.mrb[1].mxu0 }
  0xe1   :  { %v112_v14 = vadd.f32 %v103_v13, %v22_v10 }
  0xe2   :  { %116 = vst.msk [vmem:[#allocation2 + $0x8] sm:$0xff] %vm19_vm1, %v113_v12 }
  0xe3   :  { %115 = vst.msk [vmem:[#allocation2] sm:$0xff] %vm19_vm1, %v112_v14 }
  0xe9   :  { %v121_v16 = vld [vmem:[#allocation2 + $0x8] sm:$0xff] }
  0xea   :  { %v120_v17 = vld [vmem:[#allocation2] sm:$0xff]  ;;  %v130_v18 = vadd.f32 %v151_v15, %v121_v16 }
  0xeb   :  { %v129_v19 = vadd.f32 %v151_v15, %v120_v17 }
  0xec   :  { %132 = vst.msk [vmem:[#allocation3 + $0x8] sm:$0xff] %vm19_vm1, %v130_v18 }
  0xed   :  { %131 = vst.msk [vmem:[#allocation3] sm:$0xff] %vm19_vm1, %v129_v19 }
  0xee   :  { %192 = shalt.err (!%p189_p4)
}
  0xef   :  { %s193_s28 = scalar_lea.hbm %s273_s3, 256 }
  0xf0   :  { %p194_p5 = scmp.ne.s32.totalorder %s273_s3, %s193_s28  ;;  %p197_p6 = scmp.lt.u32.totalorder %s193_s28, %s273_s3 }
  0xf2   :  { %p199_p7 = pnand %p197_p6, %p194_p5 }
  0xf4   :  { %202 = shalt.err (!%p199_p7)
}
  0xf5   :  { %s207_s6 = smov 128   ;;  %s208_s7 = smov 8  }
  0xf6   :  { %144 = dma.vmem_to_hbm [thread:$0]  %s139_s26, 256, %s273_s3, [#allocation4], %s207_s6, %s207_s6, %s208_s7  }
  0xf7   :  { %203 = dma.done.wait [#allocation4], 256  }
  0xf8   :  { %204 = vsyncadd [#allocation4], 4294967040 }
  0xf9   :  { %148 = vsyncpa [#allocation4], 1 }

</bundles_post_ra>
